<compile_context>
chip_gen: v7x
topology: tpu7x:2x2x1
jax: 0.10.0
libtpu: 0.0.40
codegen_flags: <defaults>
</compile_context>

<pallas_src>
import math

import jax
import jax.numpy as jnp
from jax.experimental import pallas as pl
from jax.experimental.pallas import tpu as pltpu

LANE = 128


def _round_up(x, m):
    return ((x + m - 1) // m) * m


def _make_fused_mlp_kernel(num_layers):
    """Build a kernel taking (x_ref, w0, b0, w1, b1, ..., o_ref)."""

    def kernel(*refs):
        x_ref = refs[0]
        o_ref = refs[-1]
        wb = refs[1:-1]

        # f32 tile from HBM -> bf16 operand for the MXU (cast on the VPU, free slot).
        h = x_ref[...].astype(jnp.bfloat16)
        y = None
        for i in range(num_layers):
            w_ref = wb[2 * i]       # bf16 (d_in, d_out), VMEM-resident
            b_ref = wb[2 * i + 1]   # f32  (1, d_out)
            # bf16 x bf16 -> f32 accumulate on the MXU.
            y = jnp.dot(h, w_ref[...], preferred_element_type=jnp.float32)
            y = y + b_ref[...]      # bias add on the f32 accumulator
            if i < num_layers - 1:
                # ReLU in f32 (VPU), then bf16 operand for the next matmul.
                h = jnp.maximum(y, 0.0).astype(jnp.bfloat16)
        o_ref[...] = y.astype(o_ref.dtype)  # lane-dense (tm, Dout_pad) unmasked store

    return kernel


def yolos_mlp_prediction_head(x, params, *, tm=256):
    """Forward pass of YolosMLPPredictionHead: ReLU between layers, none after the last.

    x: (..., input_dim) float array. params: list of (w, b) with w stored as (in, out).
    """
    lead_shape = x.shape[:-1]
    din = x.shape[-1]
    dout = params[-1][0].shape[1]
    num_layers = len(params)

    m = int(math.prod(lead_shape)) if lead_shape else 1
    x2d = x.reshape(m, din).astype(jnp.float32)

    # Row tiling: tm rows per grid step (multiple of 16 keeps bf16 sublane packing happy).
    tm_eff = min(tm, _round_up(m, 16))
    m_pad = _round_up(m, tm_eff)
    if m_pad != m:
        x2d = jnp.pad(x2d, ((0, m_pad - m), (0, 0)))

    # Pad the last layer's output width to a full 128-lane slab (unmasked stores,
    # fuller MXU columns); extra columns are zeros and sliced off below.
    dout_pad = _round_up(dout, LANE)

    inputs = [x2d]
    in_specs = [pl.BlockSpec((tm_eff, din), lambda i: (i, 0))]
    for li, (w, b) in enumerate(params):
        if li == num_layers - 1 and dout_pad != dout:
            w = jnp.pad(w, ((0, 0), (0, dout_pad - dout)))
            b = jnp.pad(b, (0, dout_pad - dout))
        w_bf16 = w.astype(jnp.bfloat16)
        b_f32 = b.astype(jnp.float32).reshape(1, -1)
        inputs += [w_bf16, b_f32]
        # Constant index maps -> weights/biases remain VMEM-resident across all row tiles.
        in_specs += [
            pl.BlockSpec(w_bf16.shape, lambda i: (0, 0)),
            pl.BlockSpec(b_f32.shape, lambda i: (0, 0)),
        ]

    out = pl.pallas_call(
        _make_fused_mlp_kernel(num_layers),
        out_shape=jax.ShapeDtypeStruct((m_pad, dout_pad), jnp.float32),
        grid=(m_pad // tm_eff,),
        in_specs=in_specs,
        out_specs=pl.BlockSpec((tm_eff, dout_pad), lambda i: (i, 0)),
        compiler_params=pltpu.CompilerParams(dimension_semantics=("parallel",)),
    )(*inputs)

    return out[:m, :dout].reshape(*lead_shape, dout)


def init_mlp_params(key, input_dim, hidden_dim, output_dim, num_layers):
    """Deterministic init matching nn.Linear shapes (weights stored transposed: (in, out))."""
    h = [hidden_dim] * (num_layers - 1)
    in_dims = [input_dim] + h
    out_dims = h + [output_dim]
    params = []
    for n, k in zip(in_dims, out_dims):
        key, kw, kb = jax.random.split(key, 3)
        bound = 1.0 / jnp.sqrt(jnp.float32(n))
        w = jax.random.uniform(kw, (n, k), jnp.float32, -bound, bound)  # (in, out)
        b = jax.random.uniform(kb, (k,), jnp.float32, -bound, bound)
        params.append((w, b))
    return params


def _reference_f32(x, params):
    """Pure-JAX f32 reference of the PyTorch module."""
    x2d = x.reshape(-1, x.shape[-1]).astype(jnp.float32)
    n = len(params)
    for i, (w, b) in enumerate(params):
        x2d = x2d @ w + b
        if i < n - 1:
            x2d = jnp.maximum(x2d, 0.0)
    return x2d.reshape(*x.shape[:-1], params[-1][0].shape[1])


if __name__ == "__main__":
    # Small shapes consistent with the module: (batch, num_queries, hidden) -> 4 box coords.
    batch, num_queries = 2, 8
    input_dim, hidden_dim, output_dim, num_layers = 32, 32, 4, 3

    key = jax.random.PRNGKey(0)
    key, kx = jax.random.split(key)
    x = jax.random.normal(kx, (batch, num_queries, input_dim), jnp.float32)

    params = init_mlp_params(key, input_dim, hidden_dim, output_dim, num_layers)

    out = yolos_mlp_prediction_head(x, params)
    out = jax.block_until_ready(out)

    ref = _reference_f32(x, params)
    assert out.shape == (batch, num_queries, output_dim), out.shape
    max_err = float(jnp.max(jnp.abs(out - ref)))
    # bf16 operands with f32 accumulation -> small, bounded deviation from the f32 reference.
    assert jnp.allclose(out, ref, atol=5e-2, rtol=5e-2), max_err

    print("KERNEL_OK")
</pallas_src>

<mosaic_0001>
module attributes {stable_mosaic.version = 11 : i64} {
  func.func @kernel(%arg0: i32, %arg1: memref<16x32xf32, #tpu.memory_space<vmem>>, %arg2: memref<32x32xbf16, #tpu.memory_space<vmem>>, %arg3: memref<1x32xf32, #tpu.memory_space<vmem>>, %arg4: memref<32x32xbf16, #tpu.memory_space<vmem>>, %arg5: memref<1x32xf32, #tpu.memory_space<vmem>>, %arg6: memref<32x128xbf16, #tpu.memory_space<vmem>>, %arg7: memref<1x128xf32, #tpu.memory_space<vmem>>, %arg8: memref<16x128xf32, #tpu.memory_space<vmem>>) attributes {dimension_semantics = [#tpu.dimension_semantics<parallel>], iteration_bounds = array<i64: 1>, scalar_prefetch = 0 : i64, scratch_operands = 0 : i64, tpu.core_type = #tpu.core_type<tc>, window_params = [{transform_indices = @transform_0, window_bounds = array<i64: 16, 32>}, {pipeline_mode = #tpu.pipeline_mode<synchronous>, transform_indices = @transform_1, window_bounds = array<i64: 32, 32>}, {pipeline_mode = #tpu.pipeline_mode<synchronous>, transform_indices = @transform_2, window_bounds = array<i64: 1, 32>}, {pipeline_mode = #tpu.pipeline_mode<synchronous>, transform_indices = @transform_3, window_bounds = array<i64: 32, 32>}, {pipeline_mode = #tpu.pipeline_mode<synchronous>, transform_indices = @transform_4, window_bounds = array<i64: 1, 32>}, {pipeline_mode = #tpu.pipeline_mode<synchronous>, transform_indices = @transform_5, window_bounds = array<i64: 32, 128>}, {pipeline_mode = #tpu.pipeline_mode<synchronous>, transform_indices = @transform_6, window_bounds = array<i64: 1, 128>}, {transform_indices = @transform_7, window_bounds = array<i64: 16, 128>}]} {
    %c0 = arith.constant 0 : index
    %c0_0 = arith.constant 0 : index
    %0 = vector.load %arg1[%c0, %c0_0] : memref<16x32xf32, #tpu.memory_space<vmem>>, vector<16x32xf32>
    %1 = arith.truncf %0 : vector<16x32xf32> to vector<16x32xbf16>
    %c0_1 = arith.constant 0 : index
    %c0_2 = arith.constant 0 : index
    %2 = vector.load %arg2[%c0_1, %c0_2] : memref<32x32xbf16, #tpu.memory_space<vmem>>, vector<32x32xbf16>
    %cst = arith.constant dense<0.000000e+00> : vector<16x32xf32>
    %3 = tpu.matmul %1, %2, %cst {dimension_numbers = #tpu.dot_dimension_numbers<[1], [0], [0], [1], [0, 0, 1, 1], [], []>} : vector<16x32xbf16>, vector<32x32xbf16>, vector<16x32xf32> -> vector<16x32xf32>
    %c0_3 = arith.constant 0 : index
    %c0_4 = arith.constant 0 : index
    %4 = vector.load %arg3[%c0_3, %c0_4] : memref<1x32xf32, #tpu.memory_space<vmem>>, vector<1x32xf32>
    %5 = vector.broadcast %4 : vector<1x32xf32> to vector<16x32xf32>
    %6 = arith.addf %3, %5 : vector<16x32xf32>
    %cst_5 = arith.constant 0.000000e+00 : f32
    %7 = vector.broadcast %cst_5 : f32 to vector<16x32xf32>
    %8 = arith.maximumf %6, %7 : vector<16x32xf32>
    %9 = arith.truncf %8 : vector<16x32xf32> to vector<16x32xbf16>
    %c0_6 = arith.constant 0 : index
    %c0_7 = arith.constant 0 : index
    %10 = vector.load %arg4[%c0_6, %c0_7] : memref<32x32xbf16, #tpu.memory_space<vmem>>, vector<32x32xbf16>
    %cst_8 = arith.constant dense<0.000000e+00> : vector<16x32xf32>
    %11 = tpu.matmul %9, %10, %cst_8 {dimension_numbers = #tpu.dot_dimension_numbers<[1], [0], [0], [1], [0, 0, 1, 1], [], []>} : vector<16x32xbf16>, vector<32x32xbf16>, vector<16x32xf32> -> vector<16x32xf32>
    %c0_9 = arith.constant 0 : index
    %c0_10 = arith.constant 0 : index
    %12 = vector.load %arg5[%c0_9, %c0_10] : memref<1x32xf32, #tpu.memory_space<vmem>>, vector<1x32xf32>
    %13 = vector.broadcast %12 : vector<1x32xf32> to vector<16x32xf32>
    %14 = arith.addf %11, %13 : vector<16x32xf32>
    %cst_11 = arith.constant 0.000000e+00 : f32
    %15 = vector.broadcast %cst_11 : f32 to vector<16x32xf32>
    %16 = arith.maximumf %14, %15 : vector<16x32xf32>
    %17 = arith.truncf %16 : vector<16x32xf32> to vector<16x32xbf16>
    %c0_12 = arith.constant 0 : index
    %c0_13 = arith.constant 0 : index
    %18 = vector.load %arg6[%c0_12, %c0_13] : memref<32x128xbf16, #tpu.memory_space<vmem>>, vector<32x128xbf16>
    %cst_14 = arith.constant dense<0.000000e+00> : vector<16x128xf32>
    %19 = tpu.matmul %17, %18, %cst_14 {dimension_numbers = #tpu.dot_dimension_numbers<[1], [0], [0], [1], [0, 0, 1, 1], [], []>} : vector<16x32xbf16>, vector<32x128xbf16>, vector<16x128xf32> -> vector<16x128xf32>
    %c0_15 = arith.constant 0 : index
    %c0_16 = arith.constant 0 : index
    %20 = vector.load %arg7[%c0_15, %c0_16] : memref<1x128xf32, #tpu.memory_space<vmem>>, vector<1x128xf32>
    %21 = vector.broadcast %20 : vector<1x128xf32> to vector<16x128xf32>
    %22 = arith.addf %19, %21 : vector<16x128xf32>
    %c0_17 = arith.constant 0 : index
    %c0_18 = arith.constant 0 : index
    %23 = vector.load %arg8[%c0_17, %c0_18] : memref<16x128xf32, #tpu.memory_space<vmem>>, vector<16x128xf32>
    tpu.vector_store %arg8[%c0_17, %c0_18], %22 {strides = array<i32>} : memref<16x128xf32, #tpu.memory_space<vmem>>, vector<16x128xf32>,
    return
  }
  func.func @transform_0(%arg0: i32) -> (i32, i32) {
    %c0_i32 = arith.constant 0 : i32
    %c0_i32_0 = arith.constant 0 : i32
    return %arg0, %c0_i32 : i32, i32
  }
  func.func @transform_1(%arg0: i32) -> (i32, i32) {
    %c0_i32 = arith.constant 0 : i32
    %c0_i32_0 = arith.constant 0 : i32
    %c0_i32_1 = arith.constant 0 : i32
    return %c0_i32, %c0_i32_0 : i32, i32
  }
  func.func @transform_2(%arg0: i32) -> (i32, i32) {
    %c0_i32 = arith.constant 0 : i32
    %c0_i32_0 = arith.constant 0 : i32
    %c0_i32_1 = arith.constant 0 : i32
    return %c0_i32, %c0_i32_0 : i32, i32
  }
  func.func @transform_3(%arg0: i32) -> (i32, i32) {
    %c0_i32 = arith.constant 0 : i32
    %c0_i32_0 = arith.constant 0 : i32
    %c0_i32_1 = arith.constant 0 : i32
    return %c0_i32, %c0_i32_0 : i32, i32
  }
  func.func @transform_4(%arg0: i32) -> (i32, i32) {
    %c0_i32 = arith.constant 0 : i32
    %c0_i32_0 = arith.constant 0 : i32
    %c0_i32_1 = arith.constant 0 : i32
    return %c0_i32, %c0_i32_0 : i32, i32
  }
  func.func @transform_5(%arg0: i32) -> (i32, i32) {
    %c0_i32 = arith.constant 0 : i32
    %c0_i32_0 = arith.constant 0 : i32
    %c0_i32_1 = arith.constant 0 : i32
    return %c0_i32, %c0_i32_0 : i32, i32
  }
  func.func @transform_6(%arg0: i32) -> (i32, i32) {
    %c0_i32 = arith.constant 0 : i32
    %c0_i32_0 = arith.constant 0 : i32
    %c0_i32_1 = arith.constant 0 : i32
    return %c0_i32, %c0_i32_0 : i32, i32
  }
  func.func @transform_7(%arg0: i32) -> (i32, i32) {
    %c0_i32 = arith.constant 0 : i32
    %c0_i32_0 = arith.constant 0 : i32
    return %arg0, %c0_i32 : i32, i32
  }
}

</mosaic_0001>

<bundles_post_ra>
// kernel: tpu_custom_call.1
= control target key start
LH: loop header
LB: loop body
LE: loop exit
PB: predicated region body
PF: predicated region fallthrough
CT: control target
= control target key end

     0   :  { %12 = vsyncpa [#allocation3], 0  ;;  %s583_s0 = inlined_call_operand.hbm [shape: f32[16,32], index: 0, kind: input, shape index: {}]   ;;  %s584_s1 = inlined_call_operand.hbm [shape: bf16[32,32], index: 1, kind: input, shape index: {}]   ;;  %s585_s2 = inlined_call_operand.vmem [shape: f32[1,32], index: 2, kind: input, shape index: {}]   ;;  %s586_s3 = inlined_call_operand.hbm [shape: bf16[32,32], index: 3, kind: input, shape index: {}]   ;;  %s587_s4 = inlined_call_operand.vmem [shape: f32[1,32], index: 4, kind: input, shape index: {}]   ;;  %s588_s5 = inlined_call_operand.vmem [shape: bf16[32,128], index: 5, kind: input, shape index: {}]   ;;  %s589_s6 = inlined_call_operand.vmem [shape: f32[1,128], index: 6, kind: input, shape index: {}]   ;;  %s590_s7 = inlined_call_operand.hbm [shape: f32[16,128], index: 7, kind: output, shape index: {}]  }
   0x1   :  { %13 = vsyncpa [#allocation6], 0 }
   0x2   :  { %14 = vsyncpa [#allocation4], 0  ;;  %s455_s24 = smov [#allocation5]   ;;  %s361_s28 = scalar_lea.hbm %s584_s1, 256 }
   0x3   :  { %s32_s25 = sshll.u32 %s455_s24, 4  ;;  %p362_p0 = scmp.ne.s32.totalorder %s584_s1, %s361_s28  ;;  %s33_s25 = int_to_ptr.vmem [resolvable:$true] %s32_s25 }
   0x4   :  { %p365_p1 = scmp.lt.u32.totalorder %s361_s28, %s584_s1 }
   0x6   :  { %p367_p2 = pnand %p365_p1, %p362_p0 }
   0x8   :  { %370 = shalt.err (!%p367_p2)
}
   0x9   :  { %s371_s10 = scalar_lea.vmem %s33_s25, 256  ;;  %p376_p4 = scmp.lt.s32.totalorder %s33_s25, %s33_s25 }
   0xa   :  { %p372_p3 = scmp.ne.s32.totalorder %s33_s25, %s371_s10  ;;  %p377_p5 = scmp.lt.s32.totalorder %s371_s10, %s371_s10 }
   0xc   :  { %p378_p6 = por %p377_p5, %p376_p4 }
   0xe   :  { %p379_p7 = pnand %p378_p6, %p372_p3 }
  0x10   :  { %382 = shalt.err (!%p379_p7)
}
  0x11   :  { %s456_s11 = smov 64   ;;  %s457_s12 = smov 4  }
  0x12   :  { %38 = dma.hbm_to_vmem [thread:$0]  %s584_s1, 256, %s33_s25, [#allocation6], %s456_s11, %s456_s11, %s457_s12  }
  0x13   :  { %s458_s15 = smov [#allocation2]   ;;  %s383_s19 = scalar_lea.hbm %s583_s0, 256 }
  0x14   :  { %s20_s16 = sshll.u32 %s458_s15, 4  ;;  %p384_p8 = scmp.ne.s32.totalorder %s583_s0, %s383_s19  ;;  %s21_s16 = int_to_ptr.vmem [resolvable:$true] %s20_s16 }
  0x15   :  { %p387_p9 = scmp.lt.u32.totalorder %s383_s19, %s583_s0 }
  0x17   :  { %p389_p10 = pnand %p387_p9, %p384_p8 }
  0x19   :  { %392 = shalt.err (!%p389_p10)
}
  0x1a   :  { %s393_s24 = scalar_lea.vmem %s21_s16, 256  ;;  %p398_p12 = scmp.lt.s32.totalorder %s21_s16, %s21_s16 }
  0x1b   :  { %p394_p11 = scmp.ne.s32.totalorder %s21_s16, %s393_s24  ;;  %p399_p13 = scmp.lt.s32.totalorder %s393_s24, %s393_s24 }
  0x1d   :  { %p400_p0 = por %p399_p13, %p398_p12 }
  0x1f   :  { %p401_p1 = pnand %p400_p0, %p394_p11 }
  0x21   :  { %404 = shalt.err (!%p401_p1)
}
  0x22   :  { %s459_s1 = smov 128   ;;  %s460_s25 = smov 8  }
  0x23   :  { %26 = dma.hbm_to_vmem [thread:$0]  %s583_s0, 256, %s21_s16, [#allocation3], %s459_s1, %s459_s1, %s460_s25  }
  0x24   :  { %s461_s28 = smov [#allocation7]   ;;  %s405_s9 = scalar_lea.hbm %s586_s3, 256 }
  0x25   :  { %s46_s29 = sshll.u32 %s461_s28, 4  ;;  %p406_p2 = scmp.ne.s32.totalorder %s586_s3, %s405_s9  ;;  %s47_s29 = int_to_ptr.vmem [resolvable:$true] %s46_s29 }
  0x26   :  { %p409_p3 = scmp.lt.u32.totalorder %s405_s9, %s586_s3 }
  0x28   :  { %p411_p4 = pnand %p409_p3, %p406_p2 }
  0x2a   :  { %414 = shalt.err (!%p411_p4)
}
  0x2b   :  { %s415_s17 = scalar_lea.vmem %s47_s29, 256  ;;  %p420_p6 = scmp.lt.s32.totalorder %s47_s29, %s47_s29 }
  0x2c   :  { %p416_p5 = scmp.ne.s32.totalorder %s47_s29, %s415_s17  ;;  %p421_p7 = scmp.lt.s32.totalorder %s415_s17, %s415_s17 }
  0x2e   :  { %p422_p8 = por %p421_p7, %p420_p6 }
  0x30   :  { %p423_p9 = pnand %p422_p8, %p416_p5 }
  0x32   :  { %426 = shalt.err (!%p423_p9)
}
  0x33   :  { %52 = dma.hbm_to_vmem [thread:$0]  %s586_s3, 256, %s47_s29, [#allocation6], %s456_s11, %s456_s11, %s457_s12  }
  0x34   :  { %449 = dma.done.wait [#allocation3], 256  }
  0x35   :  { %450 = vsyncadd [#allocation3], 4294967040 }
  0x36   :  { %451 = dma.done.wait [#allocation6], 512  }
  0x37   :  { %452 = vsyncadd [#allocation6], 4294966784  ;;  %v462_v0 = vmov 0.0   ;;  %vm463_vm0 = vmmov 0   ;;  %v355_v1 = vld [vmem:[#allocation5] sm:$0xff]   ;;  %v356_v2 = vld [vmem:[#allocation5 + $0x8] sm:$0xff]  }
  0x38   :  { %321 = vmatprep.subr.bf16.mxu0 %v462_v0  ;;  %325 = vmatprep.mubr.msk.bf16.mxu0 %vm463_vm0, %v462_v0  ;;  %v69_v3 = vld [vmem:[#allocation2] sm:$0xff]  ;;  %v70_v4 = vld [vmem:[#allocation2 + $0x8] sm:$0xff]  ;;  %vm95_vm1 = vcmask 261120  }
  0x39   :  { %329 = vmatprep.subr.bf16.mxu1 %v462_v0  ;;  %333 = vmatprep.mubr.msk.bf16.mxu1 %vm463_vm0, %v462_v0  ;;  %v71_v5 = vpack.c.bf16 %v70_v4, %v69_v3  ;;  %v357_v6 = vld [vmem:[#allocation7] sm:$0xff]   ;;  %v358_v7 = vld [vmem:[#allocation7 + $0x8] sm:$0xff]  }
  0x3a   :  { %322 = vmatpush3.bf16.msra.mxu0 %v355_v1  ;;  %330 = vmatpush3.bf16.msra.mxu1 %v357_v6  ;;  %v300_v8 = vld [vmem:[%s585_s2] ss:$0 sm:$0xff]  ;;  %v360_v19 = vld [vmem:[%s588_s5 + $0x8] sm:$0xff]  }
  0x3b   :  { %323 = vmatprep.subr.bf16.mxu0 %v462_v0  ;;  %331 = vmatprep.subr.bf16.mxu1 %v462_v0  ;;  %v359_v18 = vld [vmem:[%s588_s5] sm:$0xff]   ;;  %s464_s5 = smov [#allocation8]  }
  0x3c   :  { %v304_v20 = vld [vmem:[%s587_s4] ss:$0 sm:$0xff]  ;;  %s287_s24 = sshll.u32 %s464_s5, 4  ;;  %s288_s24 = int_to_ptr.vmem [resolvable:$true] %s287_s24 }
  0x3d   :  { %v308_v30 = vld [vmem:[%s589_s6] ss:$0 sm:$0xff]  ;;  %s427_s4 = scalar_lea.vmem %s288_s24, 256  ;;  %p432_p11 = scmp.lt.s32.totalorder %s288_s24, %s288_s24 }
  0x3e   :  { %324 = vmatpush3.bf16.msra.mxu0 %v356_v2  ;;  %332 = vmatpush3.bf16.msra.mxu1 %v358_v7  ;;  %p428_p10 = scmp.ne.s32.totalorder %s288_s24, %s427_s4  ;;  %p433_p12 = scmp.lt.s32.totalorder %s427_s4, %s427_s4 }
  0x3f   :  { %337 = vmatprep.subr.bf16.mxu0 %v462_v0 }
  0x40   :  { %p434_p13 = por %p433_p12, %p432_p11 }
  0x41   :  { %326 = vmatmul.mubr.msk.bf16.vlgmr.msra.gmra.mrb[0].mxu0 %vm95_vm1, %v71_v5 }
  0x42   :  { %341 = vmatprep.mubr.msk.bf16.mxu0 %vm463_vm0, %v462_v0  ;;  %338 = vmatpush3.bf16.msra.mxu0 %v359_v18  ;;  %p435_p0 = pnand %p434_p13, %p428_p10 }
  0x43   :  { %339 = vmatprep.subr.bf16.mxu0 %v462_v0 }
  0x46   :  { %340 = vmatpush3.bf16.msra.mxu0 %v360_v19 }
 0x114   :  { %v133_v9 = vpop.f32.mrb[0].mxu0 }
 0x115   :  { %v134_v10 = vadd.f32 %v300_v8, %v133_v9  ;;  %v327_v11 = vpop.f32.mrb[1].mxu0 }
 0x116   :  { %v136_v12 = vpop.f32.mrb[2].mxu0 }
 0x117   :  { %v137_v13 = vadd.f32 %v300_v8, %v136_v12  ;;  %v328_v14 = vpop.f32.mrb[3].mxu0  ;;  %v140_v15 = vmax.f32 %v134_v10, 0.0 }
 0x119   :  { %v141_v16 = vmax.f32 %v137_v13, 0.0 }
 0x11b   :  { %v142_v17 = vpack.c.bf16 %v141_v16, %v140_v15 }
 0x11d   :  { %334 = vmatmul.mubr.msk.bf16.vlgmr.msra.gmra.mrb[0].mxu1 %vm95_vm1, %v142_v17 }
 0x1f0   :  { %v203_v21 = vpop.f32.mrb[0].mxu1 }
 0x1f1   :  { %v204_v22 = vadd.f32 %v304_v20, %v203_v21  ;;  %v335_v23 = vpop.f32.mrb[1].mxu1 }
 0x1f2   :  { %v206_v24 = vpop.f32.mrb[2].mxu1 }
 0x1f3   :  { %v207_v25 = vadd.f32 %v304_v20, %v206_v24  ;;  %v336_v26 = vpop.f32.mrb[3].mxu1  ;;  %v210_v27 = vmax.f32 %v204_v22, 0.0 }
 0x1f5   :  { %v211_v28 = vmax.f32 %v207_v25, 0.0 }
 0x1f7   :  { %v212_v29 = vpack.c.bf16 %v211_v28, %v210_v27 }
 0x1f9   :  { %342 = vmatmul.mubr.msk.bf16.vlgmr.msra.gmra.mrb[4].mxu0 %vm95_vm1, %v212_v29 }
 0x2cc   :  { %v273_v31 = vpop.f32.mrb[4].mxu0 }
 0x2cd   :  { %v274_v32 = vadd.f32 %v308_v30, %v273_v31  ;;  %v343_v33 = vpop.f32.mrb[5].mxu0 }
 0x2ce   :  { %v276_v34 = vpop.f32.mrb[6].mxu0 }
 0x2cf   :  { %280 = vst [vmem:[#allocation8] sm:$0xff] %v274_v32  ;;  %v277_v35 = vadd.f32 %v308_v30, %v276_v34  ;;  %v344_v36 = vpop.f32.mrb[7].mxu0 }
 0x2d1   :  { %281 = vst [vmem:[#allocation8 + $0x8] sm:$0xff] %v277_v35 }
 0x2d2   :  { %438 = shalt.err (!%p435_p0)
}
 0x2d3   :  { %s439_s27 = scalar_lea.hbm %s590_s7, 256 }
 0x2d4   :  { %p440_p1 = scmp.ne.s32.totalorder %s590_s7, %s439_s27  ;;  %p443_p2 = scmp.lt.u32.totalorder %s439_s27, %s590_s7 }
 0x2d6   :  { %p445_p3 = pnand %p443_p2, %p440_p1 }
 0x2d8   :  { %448 = shalt.err (!%p445_p3)
}
 0x2d9   :  { %293 = dma.vmem_to_hbm [thread:$0]  %s288_s24, 256, %s590_s7, [#allocation4], %s459_s1, %s459_s1, %s460_s25  }
 0x2da   :  { %453 = dma.done.wait [#allocation4], 256  }
 0x2db   :  { %454 = vsyncadd [#allocation4], 4294967040 }
 0x2dc   :  { %297 = vsyncpa [#allocation3], 1 }
 0x2dd   :  { %298 = vsyncpa [#allocation6], 1 }
 0x2de   :  { %299 = vsyncpa [#allocation4], 1 }

</bundles_post_ra>
